<compile_context>
chip_gen: v7x
topology: tpu7x:2x2x1
jax: 0.10.0
libtpu: 0.0.40
codegen_flags: <defaults>
</compile_context>

<pallas_src>
import jax
import jax.numpy as jnp
from jax.experimental import pallas as pl
from jax.experimental.pallas import tpu as pltpu

# ---- padded layout constants -------------------------------------------------
IN_F = 4              # real input features (CartPole state)
IN_PAD = 8            # padded input features (sublane aligned)
H1 = 64               # real hidden-1
H1_PAD = 128          # padded hidden-1 (lane dense)
H2 = 128              # hidden-2 (already lane dense)
OUT = 2               # real output (Q-values)
OUT_PAD = 8           # padded output lanes (16x less writeback than 128)

W1_OFF = 0                        # rows [0, 8)    : w1 (8x128, rows 4..7 / cols 64..127 zero)
W2_OFF = IN_PAD                   # rows [8, 136)  : w2 (128x128, rows 64..127 zero)
W3_OFF = IN_PAD + H1_PAD          # rows [136, 264): w3 (128x128, only cols 0..1 used)
B_OFF = IN_PAD + H1_PAD + H2      # rows [264, 267): b1, b2, b3
SLAB_ROWS = B_OFF + 8             # 272 (sublane-aligned)


def _round_up(n, m):
    return ((n + m - 1) // m) * m


def choose_tile(batch):
    """Largest batch tile <= 512 that still keeps >= 2 grid steps when possible."""
    b128 = _round_up(max(batch, 1), 128)
    return min(512, max(128, _round_up(b128 // 2, 128)))


def dqn_kernel(x_ref, w_ref, o_ref):
    x = x_ref[...]                                       # (tb, 8)

    w1 = w_ref[W1_OFF:W1_OFF + IN_PAD, :]                # (8, 128)
    w2 = w_ref[W2_OFF:W2_OFF + H1_PAD, :]                # (128, 128)
    w3 = w_ref[W3_OFF:W3_OFF + H2, :OUT_PAD]             # (128, 8)
    b1 = w_ref[B_OFF + 0:B_OFF + 1, :]                   # (1, 128)
    b2 = w_ref[B_OFF + 1:B_OFF + 2, :]                   # (1, 128)
    b3 = w_ref[B_OFF + 2:B_OFF + 3, :OUT_PAD]            # (1, 8)

    # fc1 + relu  (padded cols 64..127 stay exactly 0: zero W cols + zero bias)
    h1 = jnp.maximum(
        jnp.dot(x, w1, preferred_element_type=jnp.float32) + b1, 0.0)
    # fc2 + relu
    h2 = jnp.maximum(
        jnp.dot(h1, w2, preferred_element_type=jnp.float32) + b2, 0.0)
    # fc3 (no activation); padded output cols 2..7 are exactly 0
    o_ref[...] = jnp.dot(h2, w3, preferred_element_type=jnp.float32) + b3


def pad_inputs(x, tb):
    """One-time pad: (B, <=8) f32 -> (round_up(B, tb), IN_PAD) f32 (zeros elsewhere).

    Call once outside the hot loop and feed dqn_forward_padded directly.
    """
    B = x.shape[0]
    b_pad = _round_up(B, tb)
    return jnp.zeros((b_pad, IN_PAD), jnp.float32).at[:B, :x.shape[1]].set(x)


def dqn_forward_padded(x_pad, w_slab, *, tb):
    """Hot path: pre-padded (b_pad, 8) input -> padded (b_pad, 8) Q-values.

    No per-call XLA pad/slice launches; padded output cols 2..7 are exactly 0.
    """
    b_pad = x_pad.shape[0]
    n_tiles = b_pad // tb
    return pl.pallas_call(
        dqn_kernel,
        out_shape=jax.ShapeDtypeStruct((b_pad, OUT_PAD), jnp.float32),
        grid=(n_tiles,),
        in_specs=[
            pl.BlockSpec((tb, IN_PAD), lambda i: (i, 0)),       # x tile (pipelined)
            pl.BlockSpec((SLAB_ROWS, 128), lambda i: (0, 0)),   # weights+biases (resident)
        ],
        out_specs=pl.BlockSpec((tb, OUT_PAD), lambda i: (i, 0)),
        compiler_params=pltpu.CompilerParams(
            dimension_semantics=("parallel",)),                 # shards tiles on v7x's 2 TCs
    )(x_pad, w_slab)


def dqn_forward(x, w_slab, *, tb=None):
    """Convenience wrapper: x (B, 4) f32 -> (B, 2) f32 Q-values."""
    B = x.shape[0]
    if tb is None:
        tb = choose_tile(B)
    if x.shape[1] == IN_PAD and B % tb == 0:
        x_pad = x                      # already padded: skip the extra launch
    else:
        x_pad = pad_inputs(x, tb)
    out_pad = dqn_forward_padded(x_pad, w_slab, tb=tb)
    return out_pad[:B, :OUT]


def init_params(key):
    """Raw params mimicking torch.nn.Linear defaults, stored (fan_in, fan_out)."""
    dims = [(IN_F, H1), (H1, H2), (H2, OUT)]
    params = []
    keys = jax.random.split(key, 2 * len(dims))
    for i, (fan_in, fan_out) in enumerate(dims):
        bound = 1.0 / (fan_in ** 0.5)
        w = jax.random.uniform(keys[2 * i], (fan_in, fan_out), jnp.float32,
                               minval=-bound, maxval=bound)
        b = jax.random.uniform(keys[2 * i + 1], (fan_out,), jnp.float32,
                               minval=-bound, maxval=bound)
        params.extend([w, b])
    return tuple(params)


def pack_params(params):
    """Pack weights AND biases into one zero-padded (272, 128) f32 slab."""
    w1, b1, w2, b2, w3, b3 = params
    slab = jnp.zeros((SLAB_ROWS, 128), jnp.float32)
    slab = slab.at[W1_OFF:W1_OFF + IN_F, :H1].set(w1)
    slab = slab.at[W2_OFF:W2_OFF + H1, :H2].set(w2)
    slab = slab.at[W3_OFF:W3_OFF + H2, :OUT].set(w3)
    slab = slab.at[B_OFF + 0, :H1].set(b1)
    slab = slab.at[B_OFF + 1, :H2].set(b2)
    slab = slab.at[B_OFF + 2, :OUT].set(b3)
    return slab


if __name__ == "__main__":
    key = jax.random.PRNGKey(0)
    pkey, xkey = jax.random.split(key)
    raw_params = init_params(pkey)
    w_slab = pack_params(raw_params)

    # Replay-buffer-style batch (not a tile multiple -> exercises padding path).
    B = 500
    x = jax.random.normal(xkey, (B, IN_F), jnp.float32)

    # Convenience path (pads + slices).
    out = jax.block_until_ready(dqn_forward(x, w_slab))

    # Hot path: pad once outside the loop, consume padded output downstream.
    tb = choose_tile(B)                      # 256 -> 2 parallel grid steps
    x_pad = pad_inputs(x, tb)
    out_hot = jax.block_until_ready(dqn_forward_padded(x_pad, w_slab, tb=tb))

    # Reference: plain JAX with the raw (unpadded) parameters.
    w1, b1, w2, b2, w3, b3 = raw_params
    ref = jnp.maximum(x @ w1 + b1, 0.0)
    ref = jnp.maximum(ref @ w2 + b2, 0.0)
    ref = ref @ w3 + b3

    assert out.shape == (B, OUT)
    assert jnp.allclose(out, ref, atol=1e-5), "mismatch vs reference (wrapper path)"
    assert jnp.allclose(out_hot[:B, :OUT], ref, atol=1e-5), "mismatch vs reference (hot path)"

    print("KERNEL_OK")
</pallas_src>

<mosaic_0001>
module attributes {stable_mosaic.version = 11 : i64} {
  func.func @dqn_kernel(%arg0: i32, %arg1: memref<256x8xf32, #tpu.memory_space<vmem>>, %arg2: memref<272x128xf32, #tpu.memory_space<vmem>>, %arg3: memref<256x8xf32, #tpu.memory_space<vmem>>) attributes {dimension_semantics = [#tpu.dimension_semantics<parallel>], iteration_bounds = array<i64: 2>, scalar_prefetch = 0 : i64, scratch_operands = 0 : i64, tpu.core_type = #tpu.core_type<tc>, window_params = [{transform_indices = @transform_0, window_bounds = array<i64: 256, 8>}, {pipeline_mode = #tpu.pipeline_mode<synchronous>, transform_indices = @transform_1, window_bounds = array<i64: 272, 128>}, {transform_indices = @transform_2, window_bounds = array<i64: 256, 8>}]} {
    %c0 = arith.constant 0 : index
    %c0_0 = arith.constant 0 : index
    %0 = vector.load %arg1[%c0, %c0_0] : memref<256x8xf32, #tpu.memory_space<vmem>>, vector<256x8xf32>
    %c0_1 = arith.constant 0 : index
    %c0_2 = arith.constant 0 : index
    %1 = vector.load %arg2[%c0_1, %c0_2] : memref<272x128xf32, #tpu.memory_space<vmem>>, vector<8x128xf32>
    %c8 = arith.constant 8 : index
    %c0_3 = arith.constant 0 : index
    %2 = vector.load %arg2[%c8, %c0_3] : memref<272x128xf32, #tpu.memory_space<vmem>>, vector<128x128xf32>
    %c136 = arith.constant 136 : index
    %c0_4 = arith.constant 0 : index
    %3 = vector.load %arg2[%c136, %c0_4] : memref<272x128xf32, #tpu.memory_space<vmem>>, vector<128x8xf32>
    %c264 = arith.constant 264 : index
    %c0_5 = arith.constant 0 : index
    %4 = vector.load %arg2[%c264, %c0_5] : memref<272x128xf32, #tpu.memory_space<vmem>>, vector<1x128xf32>
    %c265 = arith.constant 265 : index
    %c0_6 = arith.constant 0 : index
    %5 = vector.load %arg2[%c265, %c0_6] : memref<272x128xf32, #tpu.memory_space<vmem>>, vector<1x128xf32>
    %c266 = arith.constant 266 : index
    %c0_7 = arith.constant 0 : index
    %6 = vector.load %arg2[%c266, %c0_7] : memref<272x128xf32, #tpu.memory_space<vmem>>, vector<1x8xf32>
    %cst = arith.constant dense<0.000000e+00> : vector<256x128xf32>
    %7 = tpu.matmul %0, %1, %cst {dimension_numbers = #tpu.dot_dimension_numbers<[1], [0], [0], [1], [0, 0, 1, 1], [], []>} : vector<256x8xf32>, vector<8x128xf32>, vector<256x128xf32> -> vector<256x128xf32>
    %8 = vector.broadcast %4 : vector<1x128xf32> to vector<256x128xf32>
    %9 = arith.addf %7, %8 : vector<256x128xf32>
    %cst_8 = arith.constant 0.000000e+00 : f32
    %10 = vector.broadcast %cst_8 : f32 to vector<256x128xf32>
    %11 = arith.maximumf %9, %10 : vector<256x128xf32>
    %cst_9 = arith.constant dense<0.000000e+00> : vector<256x128xf32>
    %12 = tpu.matmul %11, %2, %cst_9 {dimension_numbers = #tpu.dot_dimension_numbers<[1], [0], [0], [1], [0, 0, 1, 1], [], []>} : vector<256x128xf32>, vector<128x128xf32>, vector<256x128xf32> -> vector<256x128xf32>
    %13 = vector.broadcast %5 : vector<1x128xf32> to vector<256x128xf32>
    %14 = arith.addf %12, %13 : vector<256x128xf32>
    %cst_10 = arith.constant 0.000000e+00 : f32
    %15 = vector.broadcast %cst_10 : f32 to vector<256x128xf32>
    %16 = arith.maximumf %14, %15 : vector<256x128xf32>
    %cst_11 = arith.constant dense<0.000000e+00> : vector<256x8xf32>
    %17 = tpu.matmul %16, %3, %cst_11 {dimension_numbers = #tpu.dot_dimension_numbers<[1], [0], [0], [1], [0, 0, 1, 1], [], []>} : vector<256x128xf32>, vector<128x8xf32>, vector<256x8xf32> -> vector<256x8xf32>
    %18 = vector.broadcast %6 : vector<1x8xf32> to vector<256x8xf32>
    %19 = arith.addf %17, %18 : vector<256x8xf32>
    %c0_12 = arith.constant 0 : index
    %c0_13 = arith.constant 0 : index
    %20 = vector.load %arg3[%c0_12, %c0_13] : memref<256x8xf32, #tpu.memory_space<vmem>>, vector<256x8xf32>
    tpu.vector_store %arg3[%c0_12, %c0_13], %19 {strides = array<i32>} : memref<256x8xf32, #tpu.memory_space<vmem>>, vector<256x8xf32>,
    return
  }
  func.func @transform_0(%arg0: i32) -> (i32, i32) {
    %c0_i32 = arith.constant 0 : i32
    %c0_i32_0 = arith.constant 0 : i32
    return %arg0, %c0_i32 : i32, i32
  }
  func.func @transform_1(%arg0: i32) -> (i32, i32) {
    %c0_i32 = arith.constant 0 : i32
    %c0_i32_0 = arith.constant 0 : i32
    %c0_i32_1 = arith.constant 0 : i32
    return %c0_i32, %c0_i32_0 : i32, i32
  }
  func.func @transform_2(%arg0: i32) -> (i32, i32) {
    %c0_i32 = arith.constant 0 : i32
    %c0_i32_0 = arith.constant 0 : i32
    return %arg0, %c0_i32 : i32, i32
  }
}

</mosaic_0001>

<bundles_post_ra>
// kernel: tpu_custom_call.1
= control target key start
LH: loop header
LB: loop body
LE: loop exit
PB: predicated region body
PF: predicated region fallthrough
CT: control target
= control target key end

     0   :  { %s1633_s9 = smov 0   ;;  %s2008_s0 = inlined_call_operand.vmem [shape: f32[512,8], index: 0, kind: input, shape index: {}]   ;;  %s2009_s1 = inlined_call_operand.vmem [shape: f32[272,128], index: 1, kind: input, shape index: {}]   ;;  %s2010_s2 = inlined_call_operand.vmem [shape: f32[512,8], index: 2, kind: output, shape index: {}]  }
   0x1 LB: > { %s1151_s10 = sadd.s32 4294967295, %s1616_s9   ;;  %p1155_p0 = scmp.ge.s32.totalorder %s1616_s9, 1  ;;  %s1616_s9 = sphi %s1633_s9, %s12_s9  }
   0x2   : > { %p113_p1 = scmp.lt.s32.totalorder %s1616_s9, 3 }
   0x4   : > { %p114_p2 = pnand %p1155_p0, %p113_p1 }
   0x5   : > { %v179_v0 = vld [vmem:[%s2009_s1] sm:$0xff] (!%p114_p2)  ;;  %s1156_s13 = sshll.u32 (!%p114_p2), %s1151_s10, 5  ;;  %v180_v1 = vld [vmem:[%s2009_s1 + $0x8] sm:$0xff] (!%p114_p2)  ;;  %v181_v2 = vld [vmem:[%s2009_s1 + $0x10] sm:$0xff] (!%p114_p2)  ;;  %vm219_vm0 = vcmask (!%p114_p2), 64512  }
   0x6   : > { %117 = sbr.rel (%p114_p2) target bundleno = 730 (0x2da), region = 28  ;;  %1326 = vmatprep.subr.mxu0 (!%p114_p2), %v179_v0  ;;  %p136_p3 = scmp.lt.s32.totalorder (!%p114_p2), %s1156_s13, 63  ;;  %1600 = vmatprep.subr.mxu1 (!%p114_p2), %v179_v0  ;;  %v1536_v3 = vpack.c.bf16 (!%p114_p2), %v181_v2, %v180_v1  ;;  %v182_v7 = vld [vmem:[%s2009_s1 + $0x18] sm:$0xff] (!%p114_p2)  ;;  %v183_v8 = vld [vmem:[%s2009_s1 + $0x20] sm:$0xff] (!%p114_p2)  ;;  %v184_v15 = vld [vmem:[%s2009_s1 + $0x28] sm:$0xff] (!%p114_p2) }
   0x7   : > { %1327 = vmatpush3.msra.mxu0 (!%p114_p2), %v179_v0  ;;  %1601 = vmatpush3.msra.mxu1 (!%p114_p2), %v179_v0  ;;  %v1540_v13 = vpack.c.bf16 (!%p114_p2), %v183_v8, %v182_v7  ;;  %v185_v16 = vld [vmem:[%s2009_s1 + $0x30] sm:$0xff] (!%p114_p2)  ;;  %v186_v22 = vld [vmem:[%s2009_s1 + $0x38] sm:$0xff] (!%p114_p2)  ;;  %v187_v23 = vld [vmem:[%s2009_s1 + $0x40] sm:$0xff] (!%p114_p2) }
   0x8   : > { %1537 = vmatprep.subr.bf16.mxu1 (!%p114_p2), %v1536_v3  ;;  %v1544_v21 = vpack.c.bf16 (!%p114_p2), %v185_v16, %v184_v15  ;;  %v1548_v28 = vpack.c.bf16 (!%p114_p2), %v187_v23, %v186_v22  ;;  %v188_v29 = vld [vmem:[%s2009_s1 + $0x48] sm:$0xff] (!%p114_p2)  ;;  %v189_v30 = vld [vmem:[%s2009_s1 + $0x50] sm:$0xff] (!%p114_p2)  ;;  %v190_v36 = vld [vmem:[%s2009_s1 + $0x58] sm:$0xff] (!%p114_p2) }
   0x9   : > { %v1552_v35 = vpack.c.bf16 (!%p114_p2), %v189_v30, %v188_v29  ;;  %v191_v37 = vld [vmem:[%s2009_s1 + $0x60] sm:$0xff] (!%p114_p2)  ;;  %v192_v43 = vld [vmem:[%s2009_s1 + $0x68] sm:$0xff] (!%p114_p2)  ;;  %v193_v44 = vld [vmem:[%s2009_s1 + $0x70] sm:$0xff] (!%p114_p2) }
   0xa   : > { %v1556_v42 = vpack.c.bf16 (!%p114_p2), %v191_v37, %v190_v36  ;;  %v1560_v49 = vpack.c.bf16 (!%p114_p2), %v193_v44, %v192_v43  ;;  %v194_v54 = vld [vmem:[%s2009_s1 + $0x78] sm:$0xff] (!%p114_p2)  ;;  %v195_v55 = vld [vmem:[%s2009_s1 + $0x80] sm:$0xff] (!%p114_p2)  ;;  %v196_v57 = vld [vmem:[%s2009_s1 + $0x88] sm:$0xff] (!%p114_p2) }
   0xb   : > { %v1564_v56 = vpack.c.bf16 (!%p114_p2), %v195_v55, %v194_v54  ;;  %v197_v58 = vld [vmem:[%s2009_s1 + $0x90] sm:$0xff] (!%p114_p2)  ;;  %v198_v59 = vld [vmem:[%s2009_s1 + $0x98] sm:$0xff] (!%p114_p2)  ;;  %v199_v61 = vld [vmem:[%s2009_s1 + $0xa0] sm:$0xff] (!%p114_p2) }
   0xc   : > { %v1568_v60 = vpack.c.bf16 (!%p114_p2), %v197_v58, %v196_v57  ;;  %v1572_v62 = vpack.c.bf16 (!%p114_p2), %v199_v61, %v198_v59  ;;  %v200_v63 = vld [vmem:[%s2009_s1 + $0xa8] sm:$0xff] (!%p114_p2)  ;;  %v201_v0 = vld [vmem:[%s2009_s1 + $0xb0] sm:$0xff] (!%p114_p2)  ;;  %v202_v2 = vld [vmem:[%s2009_s1 + $0xb8] sm:$0xff] (!%p114_p2) }
   0xd   : > { %s2012_s13 = smov (!%p136_p3, %s1156_s13), 63  ;;  %v1576_v1 = vpack.c.bf16 %v201_v0, %v200_v63  ;;  %v206_v8 = vld [vmem:[%s2009_s1 + $0xd8] sm:$0xff] }
   0xe   : > { %s1157_s18 = sshll.u32 %s2012_s13, 3  ;;  %1569 = vmatprep.subr.bf16.mxu0 %v1568_v60 }
   0xf   : > { %s1658_s21 = scalar_lea.vmem %s2008_s0, %s1157_s18  ;;  %s1907_s14 = scalar_lea.vmem %s2010_s2, %s1157_s18 }
  0x10   : > { %v147_v4 = vld [vmem:[%s1658_s21] sm:$0xff]  ;;  %v148_v5 = vld [vmem:[%s1658_s21 + $0x8] sm:$0xff]  ;;  %v149_v6 = vld [vmem:[%s1658_s21 + $0x10] sm:$0xff] }
  0x11   : > { %1328 = vmatprep.mubr.msk.f32.mxu0 %vm219_vm0, %v147_v4  ;;  %v150_v9 = vld [vmem:[%s1658_s21 + $0x18] sm:$0xff]  ;;  %v151_v10 = vld [vmem:[%s1658_s21 + $0x20] sm:$0xff]  ;;  %v164_v12 = vld [vmem:[%s1658_s21 + $0x88] sm:$0xff] }
  0x12   : > { %1329 = vmatmul.mubr.msk.f32.vlgmr.msra.gmra.mrb[0].mxu0 %vm219_vm0, %v148_v5  ;;  %v163_v11 = vld [vmem:[%s1658_s21 + $0x80] sm:$0xff]  ;;  %v165_v14 = vld [vmem:[%s1658_s21 + $0x90] sm:$0xff]  ;;  %v152_v17 = vld [vmem:[%s1658_s21 + $0x28] sm:$0xff] }
  0x13   : > { %1331 = vmatprep.mubr.msk.f32.mxu0 %vm219_vm0, %v149_v6  ;;  %1352 = vmatprep.mubr.msk.f32.mxu1 %vm219_vm0, %v163_v11  ;;  %v153_v18 = vld [vmem:[%s1658_s21 + $0x30] sm:$0xff]  ;;  %v166_v19 = vld [vmem:[%s1658_s21 + $0x98] sm:$0xff]  ;;  %v167_v20 = vld [vmem:[%s1658_s21 + $0xa0] sm:$0xff] }
  0x14   : > { %1353 = vmatmul.mubr.msk.f32.vlgmr.msra.gmra.mrb[0].mxu1 %vm219_vm0, %v164_v12  ;;  %v154_v24 = vld [vmem:[%s1658_s21 + $0x38] sm:$0xff]  ;;  %v155_v25 = vld [vmem:[%s1658_s21 + $0x40] sm:$0xff]  ;;  %v168_v26 = vld [vmem:[%s1658_s21 + $0xa8] sm:$0xff]  ;;  %1571 = vmatpush3.bf16.msra.mxu0 %v1568_v60 }
  0x15   : > { %1355 = vmatprep.mubr.msk.f32.mxu1 %vm219_vm0, %v165_v14  ;;  %1539 = vmatpush3.bf16.msra.mxu1 %v1536_v3  ;;  %v169_v27 = vld [vmem:[%s1658_s21 + $0xb0] sm:$0xff]  ;;  %v156_v31 = vld [vmem:[%s1658_s21 + $0x48] sm:$0xff]  ;;  %v170_v33 = vld [vmem:[%s1658_s21 + $0xb8] sm:$0xff] }
  0x16   : > { %1332 = vmatmul.mubr.msk.f32.gmra.mrb[2].mxu0 %vm219_vm0, %v150_v9  ;;  %1541 = vmatprep.subr.bf16.mxu1 %v1540_v13  ;;  %v157_v32 = vld [vmem:[%s1658_s21 + $0x50] sm:$0xff]  ;;  %v171_v34 = vld [vmem:[%s1658_s21 + $0xc0] sm:$0xff]  ;;  %v158_v38 = vld [vmem:[%s1658_s21 + $0x58] sm:$0xff] }
  0x17   : > { %1334 = vmatprep.mubr.msk.f32.mxu0 %vm219_vm0, %v151_v10  ;;  %v159_v39 = vld [vmem:[%s1658_s21 + $0x60] sm:$0xff]  ;;  %v172_v40 = vld [vmem:[%s1658_s21 + $0xc8] sm:$0xff]  ;;  %v173_v41 = vld [vmem:[%s1658_s21 + $0xd0] sm:$0xff]  ;;  %1573 = vmatprep.subr.bf16.mxu0 %v1572_v62 }
  0x18   : > { %1356 = vmatmul.mubr.msk.f32.gmra.mrb[2].mxu1 %vm219_vm0, %v166_v19  ;;  %v160_v45 = vld [vmem:[%s1658_s21 + $0x68] sm:$0xff]  ;;  %v161_v46 = vld [vmem:[%s1658_s21 + $0x70] sm:$0xff]  ;;  %v174_v47 = vld [vmem:[%s1658_s21 + $0xd8] sm:$0xff]  ;;  %1575 = vmatpush3.bf16.msra.mxu0 %v1572_v62 }
  0x19   : > { %1358 = vmatprep.mubr.msk.f32.mxu1 %vm219_vm0, %v167_v20  ;;  %1543 = vmatpush3.bf16.msra.mxu1 %v1540_v13  ;;  %v175_v48 = vld [vmem:[%s1658_s21 + $0xe0] sm:$0xff]  ;;  %v162_v50 = vld [vmem:[%s1658_s21 + $0x78] sm:$0xff]  ;;  %v176_v51 = vld [vmem:[%s1658_s21 + $0xe8] sm:$0xff] }
  0x1a   : > { %1335 = vmatmul.mubr.msk.f32.gmra.mrb[4].mxu0 %vm219_vm0, %v152_v17  ;;  %1545 = vmatprep.subr.bf16.mxu1 %v1544_v21  ;;  %v177_v52 = vld [vmem:[%s1658_s21 + $0xf0] sm:$0xff]  ;;  %v178_v53 = vld [vmem:[%s1658_s21 + $0xf8] sm:$0xff]  ;;  %v203_v3 = vld [vmem:[%s2009_s1 + $0xc0] sm:$0xff] }
  0x1b   : > { %1337 = vmatprep.mubr.msk.f32.mxu0 %vm219_vm0, %v153_v18  ;;  %1577 = vmatprep.subr.bf16.mxu0 %v1576_v1  ;;  %v1580_v4 = vpack.c.bf16 %v203_v3, %v202_v2  ;;  %v204_v5 = vld [vmem:[%s2009_s1 + $0xc8] sm:$0xff]  ;;  %v205_v6 = vld [vmem:[%s2009_s1 + $0xd0] sm:$0xff]  ;;  %v207_v9 = vld [vmem:[%s2009_s1 + $0xe0] sm:$0xff] }
  0x1c   : > { %1359 = vmatmul.mubr.msk.f32.gmra.mrb[4].mxu1 %vm219_vm0, %v168_v26  ;;  %1579 = vmatpush3.bf16.msra.mxu0 %v1576_v1  ;;  %v1584_v7 = vpack.c.bf16 %v205_v6, %v204_v5  ;;  %v1588_v10 = vpack.c.bf16 %v207_v9, %v206_v8  ;;  %v208_v11 = vld [vmem:[%s2009_s1 + $0xe8] sm:$0xff]  ;;  %v209_v12 = vld [vmem:[%s2009_s1 + $0xf0] sm:$0xff] }
  0x1d   : > { %1361 = vmatprep.mubr.msk.f32.mxu1 %vm219_vm0, %v169_v27  ;;  %1547 = vmatpush3.bf16.msra.mxu1 %v1544_v21  ;;  %v1592_v13 = vpack.c.bf16 %v209_v12, %v208_v11  ;;  %v1811_v14 = vld [vmem:[%s2009_s1 + $0x108] ss:$0 sm:$0xff] }
  0x1e   : > { %1338 = vmatmul.mubr.msk.f32.gmra.mrb[6].mxu0 %vm219_vm0, %v154_v24  ;;  %1549 = vmatprep.subr.bf16.mxu1 %v1548_v28 }
  0x1f   : > { %1340 = vmatprep.mubr.msk.f32.mxu0 %vm219_vm0, %v155_v25  ;;  %1581 = vmatprep.subr.bf16.mxu0 %v1580_v4 }
  0x20   : > { %1362 = vmatmul.mubr.msk.f32.gmra.mrb[6].mxu1 %vm219_vm0, %v170_v33  ;;  %1583 = vmatpush3.bf16.msra.mxu0 %v1580_v4 }
  0x21   : > { %1364 = vmatprep.mubr.msk.f32.mxu1 %vm219_vm0, %v171_v34  ;;  %1551 = vmatpush3.bf16.msra.mxu1 %v1548_v28 }
  0x22   : > { %1341 = vmatmul.mubr.msk.f32.gmra.mrb[8].mxu0 %vm219_vm0, %v156_v31  ;;  %1553 = vmatprep.subr.bf16.mxu1 %v1552_v35 }
  0x23   : > { %1343 = vmatprep.mubr.msk.f32.mxu0 %vm219_vm0, %v157_v32  ;;  %1585 = vmatprep.subr.bf16.mxu0 %v1584_v7 }
  0x24   : > { %1365 = vmatmul.mubr.msk.f32.gmra.mrb[8].mxu1 %vm219_vm0, %v172_v40  ;;  %1587 = vmatpush3.bf16.msra.mxu0 %v1584_v7 }
  0x25   : > { %1367 = vmatprep.mubr.msk.f32.mxu1 %vm219_vm0, %v173_v41  ;;  %1555 = vmatpush3.bf16.msra.mxu1 %v1552_v35 }
  0x26   : > { %1344 = vmatmul.mubr.msk.f32.gmra.mrb[10].mxu0 %vm219_vm0, %v158_v38  ;;  %1557 = vmatprep.subr.bf16.mxu1 %v1556_v42 }
  0x27   : > { %1346 = vmatprep.mubr.msk.f32.mxu0 %vm219_vm0, %v159_v39  ;;  %1589 = vmatprep.subr.bf16.mxu0 %v1588_v10 }
  0x28   : > { %1368 = vmatmul.mubr.msk.f32.gmra.mrb[10].mxu1 %vm219_vm0, %v174_v47  ;;  %1591 = vmatpush3.bf16.msra.mxu0 %v1588_v10 }
  0x29   : > { %1370 = vmatprep.mubr.msk.f32.mxu1 %vm219_vm0, %v175_v48  ;;  %1559 = vmatpush3.bf16.msra.mxu1 %v1556_v42 }
  0x2a   : > { %1347 = vmatmul.mubr.msk.f32.gmra.mrb[12].mxu0 %vm219_vm0, %v160_v45  ;;  %1561 = vmatprep.subr.bf16.mxu1 %v1560_v49 }
  0x2b   : > { %1349 = vmatprep.mubr.msk.f32.mxu0 %vm219_vm0, %v161_v46  ;;  %1593 = vmatprep.subr.bf16.mxu0 %v1592_v13 }
  0x2c   : > { %1371 = vmatmul.mubr.msk.f32.gmra.mrb[12].mxu1 %vm219_vm0, %v176_v51  ;;  %1595 = vmatpush3.bf16.msra.mxu0 %v1592_v13 }
  0x2d   : > { %1373 = vmatprep.mubr.msk.f32.mxu1 %vm219_vm0, %v177_v52  ;;  %1563 = vmatpush3.bf16.msra.mxu1 %v1560_v49 }
  0x2e   : > { %1350 = vmatmul.mubr.msk.f32.gmra.mrb[14].mxu0 %vm219_vm0, %v162_v50  ;;  %1565 = vmatprep.subr.bf16.mxu1 %v1564_v56 }
  0x30   : > { %1374 = vmatmul.mubr.msk.f32.gmra.mrb[14].mxu1 %vm219_vm0, %v178_v53 }
  0x31   : > { %1567 = vmatpush3.bf16.msra.mxu1 %v1564_v56 }
  0xe5   : > { %v1330_v15 = vpop.f32.mrb[0].mxu0 }
  0xe6   : > { %v388_v16 = vadd.f32 %v1330_v15, %v1811_v14  ;;  %v382_v17 = vpop.f32.mrb[1].mxu0 }
  0xe7   : > { %v383_v18 = vadd.f32 %v1811_v14, %v382_v17  ;;  %v1816_v24 = vpop.f32.mrb[0].mxu1 }
  0xe8   : > { %v542_v21 = vmax.f32 %v388_v16, 0.0  ;;  %v462_v26 = vpop.f32.mrb[1].mxu1  ;;  %v468_v17 = vadd.f32 %v1816_v24, %v1811_v14 }
  0xe9   : > { %v541_v19 = vmax.f32 %v383_v18, 0.0  ;;  %v1333_v20 = vpop.f32.mrb[2].mxu0  ;;  %v463_v5 = vadd.f32 %v1811_v14, %v462_v26 }
  0xea   : > { %v398_v22 = vadd.f32 %v1333_v20, %v1811_v14  ;;  %v392_v23 = vpop.f32.mrb[3].mxu0 }
  0xeb   : > { %v393_v25 = vadd.f32 %v1811_v14, %v392_v23  ;;  %1408 = vmatprep.mubr.f32.mxu1 %v541_v19  ;;  %v1820_v32 = vpop.f32.mrb[2].mxu1  ;;  %v557_v13 = vmax.f32 %v463_v5, 0.0 }
  0xec   : > { %1409 = vmatmul.mubr.f32.vlgmr.msra.gmra.mrb[16].mxu1 %v542_v21  ;;  %v544_v29 = vmax.f32 %v398_v22, 0.0  ;;  %v472_v34 = vpop.f32.mrb[3].mxu1  ;;  %v558_v22 = vmax.f32 %v468_v17, 0.0  ;;  %v478_v23 = vadd.f32 %v1820_v32, %v1811_v14 }
  0xed   : > { %v543_v27 = vmax.f32 %v393_v25, 0.0  ;;  %v1336_v28 = vpop.f32.mrb[4].mxu0  ;;  %v473_v15 = vadd.f32 %v1811_v14, %v472_v34 }
  0xee   : > { %v408_v30 = vadd.f32 %v1336_v28, %v1811_v14  ;;  %v402_v31 = vpop.f32.mrb[5].mxu0 }
  0xef   : > { %v403_v33 = vadd.f32 %v1811_v14, %v402_v31  ;;  %1411 = vmatprep.mubr.f32.mxu1 %v543_v27  ;;  %v1824_v40 = vpop.f32.mrb[4].mxu1  ;;  %v559_v20 = vmax.f32 %v473_v15, 0.0  ;;  %v560_v27 = vmax.f32 %v478_v23, 0.0 }
  0xf0   : > { %1412 = vmatmul.mubr.f32.gmra.mrb[18].mxu1 %v544_v29  ;;  %v546_v37 = vmax.f32 %v408_v30, 0.0  ;;  %v482_v42 = vpop.f32.mrb[5].mxu1  ;;  %v488_v24 = vadd.f32 %v1824_v40, %v1811_v14 }
  0xf1   : > { %v545_v35 = vmax.f32 %v403_v33, 0.0  ;;  %v1339_v36 = vpop.f32.mrb[6].mxu0  ;;  %v483_v21 = vadd.f32 %v1811_v14, %v482_v42 }
  0xf2   : > { %v418_v38 = vadd.f32 %v1339_v36, %v1811_v14  ;;  %v412_v39 = vpop.f32.mrb[7].mxu0  ;;  %v562_v30 = vmax.f32 %v488_v24, 0.0 }
  0xf3   : > { %v413_v41 = vadd.f32 %v1811_v14, %v412_v39  ;;  %1414 = vmatprep.mubr.f32.mxu1 %v545_v35  ;;  %v1363_v48 = vpop.f32.mrb[6].mxu1  ;;  %v561_v25 = vmax.f32 %v483_v21, 0.0 }
  0xf4   : > { %1415 = vmatmul.mubr.f32.gmra.mrb[20].mxu1 %v546_v37  ;;  %v548_v45 = vmax.f32 %v418_v38, 0.0  ;;  %v492_v50 = vpop.f32.mrb[7].mxu1  ;;  %v498_v31 = vadd.f32 %v1363_v48, %v1811_v14  ;;  %v210_v48 = vld [vmem:[%s2009_s1 + $0xf8] sm:$0xff] }
  0xf5   : > { %v547_v43 = vmax.f32 %v413_v41, 0.0  ;;  %v1342_v44 = vpop.f32.mrb[8].mxu0  ;;  %v493_v26 = vadd.f32 %v1811_v14, %v492_v50 }
  0xf6   : > { %v428_v46 = vadd.f32 %v1342_v44, %v1811_v14  ;;  %v422_v47 = vpop.f32.mrb[9].mxu0  ;;  %v564_v34 = vmax.f32 %v498_v31, 0.0 }
  0xf7   : > { %v423_v49 = vadd.f32 %v1811_v14, %v422_v47  ;;  %1417 = vmatprep.mubr.f32.mxu1 %v547_v43  ;;  %v1366_v56 = vpop.f32.mrb[8].mxu1  ;;  %v563_v28 = vmax.f32 %v493_v26, 0.0 }
  0xf8   : > { %1418 = vmatmul.mubr.f32.gmra.mrb[22].mxu1 %v548_v45  ;;  %v550_v53 = vmax.f32 %v428_v46, 0.0  ;;  %v502_v58 = vpop.f32.mrb[9].mxu1  ;;  %v508_v35 = vadd.f32 %v1366_v56, %v1811_v14 }
  0xf9   : > { %v549_v51 = vmax.f32 %v423_v49, 0.0  ;;  %v1345_v52 = vpop.f32.mrb[10].mxu0  ;;  %v503_v29 = vadd.f32 %v1811_v14, %v502_v58  ;;  %v211_v49 = vld [vmem:[%s2009_s1 + $0x100] sm:$0xff] }
  0xfa   : > { %v438_v54 = vadd.f32 %v1345_v52, %v1811_v14  ;;  %v432_v55 = vpop.f32.mrb[11].mxu0  ;;  %v566_v38 = vmax.f32 %v508_v35, 0.0  ;;  %v1596_v50 = vpack.c.bf16 %v211_v49, %v210_v48 }
  0xfb   : > { %v433_v57 = vadd.f32 %v1811_v14, %v432_v55  ;;  %1420 = vmatprep.mubr.f32.mxu1 %v549_v51  ;;  %v1369_v0 = vpop.f32.mrb[10].mxu1  ;;  %v565_v33 = vmax.f32 %v503_v29, 0.0  ;;  %v1863_v51 = vld [vmem:[%s2009_s1 + $0x109] ss:$0 sm:$0xff] }
  0xfc   : > { %1421 = vmatmul.mubr.f32.gmra.mrb[24].mxu1 %v550_v53  ;;  %v552_v61 = vmax.f32 %v438_v54, 0.0  ;;  %v512_v2 = vpop.f32.mrb[11].mxu1  ;;  %v518_v39 = vadd.f32 %v1369_v0, %v1811_v14  ;;  %1597 = vmatprep.subr.bf16.mxu0 %v1596_v50 }
  0xfd   : > { %v551_v59 = vmax.f32 %v433_v57, 0.0  ;;  %v1348_v60 = vpop.f32.mrb[12].mxu0  ;;  %v513_v32 = vadd.f32 %v1811_v14, %v512_v2  ;;  %1599 = vmatpush3.bf16.msra.mxu0 %v1596_v50 }
  0xfe   : > { %v448_v62 = vadd.f32 %v1348_v60, %v1811_v14  ;;  %v442_v63 = vpop.f32.mrb[13].mxu0  ;;  %v568_v42 = vmax.f32 %v518_v39, 0.0 }
  0xff   : > { %v443_v1 = vadd.f32 %v1811_v14, %v442_v63  ;;  %1423 = vmatprep.mubr.f32.mxu1 %v551_v59  ;;  %v1372_v9 = vpop.f32.mrb[12].mxu1  ;;  %v567_v36 = vmax.f32 %v513_v32, 0.0 }
 0x100   : > { %1424 = vmatmul.mubr.f32.gmra.mrb[26].mxu1 %v552_v61  ;;  %v554_v6 = vmax.f32 %v448_v62, 0.0  ;;  %v522_v11 = vpop.f32.mrb[13].mxu1  ;;  %v528_v43 = vadd.f32 %v1372_v9, %v1811_v14 }
 0x101   : > { %v553_v3 = vmax.f32 %v443_v1, 0.0  ;;  %v1351_v4 = vpop.f32.mrb[14].mxu0  ;;  %v523_v37 = vadd.f32 %v1811_v14, %v522_v11 }
 0x102   : > { %v458_v7 = vadd.f32 %v1351_v4, %v1811_v14  ;;  %v452_v8 = vpop.f32.mrb[15].mxu0  ;;  %v570_v45 = vmax.f32 %v528_v43, 0.0 }
 0x103   : > { %v453_v10 = vadd.f32 %v1811_v14, %v452_v8  ;;  %1426 = vmatprep.mubr.f32.mxu1 %v553_v3  ;;  %v1375_v18 = vpop.f32.mrb[14].mxu1  ;;  %v569_v40 = vmax.f32 %v523_v37, 0.0 }
 0x104   : > { %1427 = vmatmul.mubr.f32.gmra.mrb[28].mxu1 %v554_v6  ;;  %v556_v16 = vmax.f32 %v458_v7, 0.0  ;;  %v532_v19 = vpop.f32.mrb[15].mxu1  ;;  %v538_v46 = vadd.f32 %v1375_v18, %v1811_v14 }
 0x105   : > { %v555_v12 = vmax.f32 %v453_v10, 0.0  ;;  %v533_v41 = vadd.f32 %v1811_v14, %v532_v19 }
 0x106   : > { %v572_v47 = vmax.f32 %v538_v46, 0.0 }
 0x107   : > { %1429 = vmatprep.mubr.f32.mxu1 %v555_v12  ;;  %v571_v44 = vmax.f32 %v533_v41, 0.0 }
 0x108   : > { %1430 = vmatmul.mubr.f32.gmra.mrb[30].mxu1 %v556_v16 }
 0x109   : > { %1432 = vmatprep.mubr.f32.mxu1 %v557_v13 }
 0x10c   : > { %1433 = vmatmul.mubr.f32.gmra.mrb[32].mxu1 %v558_v22 }
 0x10d   : > { %1435 = vmatprep.mubr.f32.mxu1 %v559_v20 }
 0x110   : > { %1436 = vmatmul.mubr.f32.gmra.mrb[34].mxu1 %v560_v27 }
 0x111   : > { %1438 = vmatprep.mubr.f32.mxu1 %v561_v25 }
 0x114   : > { %1439 = vmatmul.mubr.f32.gmra.mrb[36].mxu1 %v562_v30 }
 0x115   : > { %1441 = vmatprep.mubr.f32.mxu1 %v563_v28 }
 0x118   : > { %1442 = vmatmul.mubr.f32.gmra.mrb[38].mxu1 %v564_v34 }
 0x119   : > { %1444 = vmatprep.mubr.f32.mxu1 %v565_v33 }
 0x11c   : > { %1445 = vmatmul.mubr.f32.gmra.mrb[40].mxu1 %v566_v38 }
 0x11d   : > { %1447 = vmatprep.mubr.f32.mxu1 %v567_v36 }
 0x120   : > { %1448 = vmatmul.mubr.f32.gmra.mrb[42].mxu1 %v568_v42 }
 0x121   : > { %1450 = vmatprep.mubr.f32.mxu1 %v569_v40 }
 0x124   : > { %1451 = vmatmul.mubr.f32.gmra.mrb[44].mxu1 %v570_v45 }
 0x125   : > { %1453 = vmatprep.mubr.f32.mxu1 %v571_v44 }
 0x128   : > { %1454 = vmatmul.mubr.f32.gmra.mrb[46].mxu1 %v572_v47 }
 0x1bf   : > { %v1410_v14 = vpop.f32.mrb[16].mxu1 }
 0x1c0   : > { %v649_v52 = vadd.f32 %v1410_v14, %v1863_v51  ;;  %v643_v53 = vpop.f32.mrb[17].mxu1 }
 0x1c1   : > { %v644_v54 = vadd.f32 %v1863_v51, %v643_v53 }
 0x1c2   : > { %v803_v57 = vmax.f32 %v649_v52, 0.0 }
 0x1c3   : > { %v802_v55 = vmax.f32 %v644_v54, 0.0  ;;  %v1413_v56 = vpop.f32.mrb[18].mxu1 }
 0x1c4   : > { %v659_v58 = vadd.f32 %v1413_v56, %v1863_v51  ;;  %v653_v59 = vpop.f32.mrb[19].mxu1 }
 0x1c5   : > { %v654_v60 = vadd.f32 %v1863_v51, %v653_v59  ;;  %1488 = vmatprep.mubr.f32.mxu0 %v802_v55 }
 0x1c6   : > { %1489 = vmatmul.mubr.f32.vlgmr.msra.gmra.mrb[16].mxu0 %v803_v57  ;;  %v805_v63 = vmax.f32 %v659_v58, 0.0 }
 0x1c7   : > { %v804_v61 = vmax.f32 %v654_v60, 0.0  ;;  %v1416_v62 = vpop.f32.mrb[20].mxu1 }
 0x1c8   : > { %v669_v0 = vadd.f32 %v1416_v62, %v1863_v51  ;;  %v663_v1 = vpop.f32.mrb[21].mxu1 }
 0x1c9   : > { %v664_v2 = vadd.f32 %v1863_v51, %v663_v1  ;;  %1491 = vmatprep.mubr.f32.mxu0 %v804_v61 }
 0x1ca   : > { %1492 = vmatmul.mubr.f32.gmra.mrb[18].mxu0 %v805_v63  ;;  %v807_v5 = vmax.f32 %v669_v0, 0.0 }
 0x1cb   : > { %v806_v3 = vmax.f32 %v664_v2, 0.0  ;;  %v1419_v4 = vpop.f32.mrb[22].mxu1 }
 0x1cc   : > { %v679_v6 = vadd.f32 %v1419_v4, %v1863_v51  ;;  %v673_v7 = vpop.f32.mrb[23].mxu1 }
 0x1cd   : > { %v674_v8 = vadd.f32 %v1863_v51, %v673_v7  ;;  %1494 = vmatprep.mubr.f32.mxu0 %v806_v3 }
 0x1ce   : > { %1495 = vmatmul.mubr.f32.gmra.mrb[20].mxu0 %v807_v5  ;;  %v809_v11 = vmax.f32 %v679_v6, 0.0 }
 0x1cf   : > { %v808_v9 = vmax.f32 %v674_v8, 0.0  ;;  %v1422_v10 = vpop.f32.mrb[24].mxu1 }
 0x1d0   : > { %v689_v12 = vadd.f32 %v1422_v10, %v1863_v51  ;;  %v683_v13 = vpop.f32.mrb[25].mxu1 }
 0x1d1   : > { %v684_v15 = vadd.f32 %v1863_v51, %v683_v13  ;;  %1497 = vmatprep.mubr.f32.mxu0 %v808_v9 }
 0x1d2   : > { %1498 = vmatmul.mubr.f32.gmra.mrb[22].mxu0 %v809_v11  ;;  %v811_v18 = vmax.f32 %v689_v12, 0.0 }
 0x1d3   : > { %v810_v16 = vmax.f32 %v684_v15, 0.0  ;;  %v1425_v17 = vpop.f32.mrb[26].mxu1 }
 0x1d4   : > { %v699_v19 = vadd.f32 %v1425_v17, %v1863_v51  ;;  %v693_v20 = vpop.f32.mrb[27].mxu1 }
 0x1d5   : > { %v694_v21 = vadd.f32 %v1863_v51, %v693_v20  ;;  %1500 = vmatprep.mubr.f32.mxu0 %v810_v16 }
 0x1d6   : > { %1501 = vmatmul.mubr.f32.gmra.mrb[24].mxu0 %v811_v18  ;;  %v813_v25 = vmax.f32 %v699_v19, 0.0 }
 0x1d7   : > { %v812_v22 = vmax.f32 %v694_v21, 0.0  ;;  %v1428_v23 = vpop.f32.mrb[28].mxu1  ;;  %v1900_v21 = vld [vmem:[%s2009_s1 + $0x10a] ss:$0 sm:$0xff] }
 0x1d8   : > { %v709_v26 = vadd.f32 %v1428_v23, %v1863_v51  ;;  %v703_v27 = vpop.f32.mrb[29].mxu1 }
 0x1d9   : > { %v704_v24 = vadd.f32 %v1863_v51, %v703_v27  ;;  %1503 = vmatprep.mubr.f32.mxu0 %v812_v22 }
 0x1da   : > { %1504 = vmatmul.mubr.f32.gmra.mrb[26].mxu0 %v813_v25  ;;  %v815_v30 = vmax.f32 %v709_v26, 0.0 }
 0x1db   : > { %v814_v28 = vmax.f32 %v704_v24, 0.0  ;;  %v1431_v29 = vpop.f32.mrb[30].mxu1 }
 0x1dc   : > { %v719_v31 = vadd.f32 %v1431_v29, %v1863_v51  ;;  %v713_v33 = vpop.f32.mrb[31].mxu1 }
 0x1dd   : > { %v714_v32 = vadd.f32 %v1863_v51, %v713_v33  ;;  %1506 = vmatprep.mubr.f32.mxu0 %v814_v28 }
 0x1de   : > { %1507 = vmatmul.mubr.f32.gmra.mrb[28].mxu0 %v815_v30  ;;  %v817_v36 = vmax.f32 %v719_v31, 0.0 }
 0x1df   : > { %v816_v34 = vmax.f32 %v714_v32, 0.0  ;;  %v1434_v35 = vpop.f32.mrb[32].mxu1 }
 0x1e0   : > { %v729_v37 = vadd.f32 %v1434_v35, %v1863_v51  ;;  %v723_v38 = vpop.f32.mrb[33].mxu1 }
 0x1e1   : > { %v724_v39 = vadd.f32 %v1863_v51, %v723_v38  ;;  %1509 = vmatprep.mubr.f32.mxu0 %v816_v34 }
 0x1e2   : > { %1510 = vmatmul.mubr.f32.gmra.mrb[30].mxu0 %v817_v36  ;;  %v819_v42 = vmax.f32 %v729_v37, 0.0 }
 0x1e3   : > { %v818_v40 = vmax.f32 %v724_v39, 0.0  ;;  %v1437_v41 = vpop.f32.mrb[34].mxu1 }
 0x1e4   : > { %v739_v43 = vadd.f32 %v1437_v41, %v1863_v51  ;;  %v733_v44 = vpop.f32.mrb[35].mxu1 }
 0x1e5   : > { %v734_v45 = vadd.f32 %v1863_v51, %v733_v44  ;;  %1512 = vmatprep.mubr.f32.mxu0 %v818_v40 }
 0x1e6   : > { %1513 = vmatmul.mubr.f32.gmra.mrb[32].mxu0 %v819_v42  ;;  %v821_v48 = vmax.f32 %v739_v43, 0.0 }
 0x1e7   : > { %v820_v46 = vmax.f32 %v734_v45, 0.0  ;;  %v1440_v47 = vpop.f32.mrb[36].mxu1 }
 0x1e8   : > { %v749_v49 = vadd.f32 %v1440_v47, %v1863_v51  ;;  %v743_v50 = vpop.f32.mrb[37].mxu1 }
 0x1e9   : > { %v744_v14 = vadd.f32 %v1863_v51, %v743_v50  ;;  %1515 = vmatprep.mubr.f32.mxu0 %v820_v46 }
 0x1ea   : > { %1516 = vmatmul.mubr.f32.gmra.mrb[34].mxu0 %v821_v48  ;;  %v823_v54 = vmax.f32 %v749_v49, 0.0 }
 0x1eb   : > { %v822_v52 = vmax.f32 %v744_v14, 0.0  ;;  %v1443_v53 = vpop.f32.mrb[38].mxu1 }
 0x1ec   : > { %v759_v55 = vadd.f32 %v1443_v53, %v1863_v51  ;;  %v753_v56 = vpop.f32.mrb[39].mxu1 }
 0x1ed   : > { %v754_v57 = vadd.f32 %v1863_v51, %v753_v56  ;;  %1518 = vmatprep.mubr.f32.mxu0 %v822_v52 }
 0x1ee   : > { %1519 = vmatmul.mubr.f32.gmra.mrb[36].mxu0 %v823_v54  ;;  %v825_v60 = vmax.f32 %v759_v55, 0.0 }
 0x1ef   : > { %v824_v58 = vmax.f32 %v754_v57, 0.0  ;;  %v1446_v59 = vpop.f32.mrb[40].mxu1 }
 0x1f0   : > { %v769_v61 = vadd.f32 %v1446_v59, %v1863_v51  ;;  %v763_v62 = vpop.f32.mrb[41].mxu1 }
 0x1f1   : > { %v764_v63 = vadd.f32 %v1863_v51, %v763_v62  ;;  %1521 = vmatprep.mubr.f32.mxu0 %v824_v58 }
 0x1f2   : > { %1522 = vmatmul.mubr.f32.gmra.mrb[38].mxu0 %v825_v60  ;;  %v827_v2 = vmax.f32 %v769_v61, 0.0 }
 0x1f3   : > { %v826_v0 = vmax.f32 %v764_v63, 0.0  ;;  %v1449_v1 = vpop.f32.mrb[42].mxu1 }
 0x1f4   : > { %v779_v3 = vadd.f32 %v1449_v1, %v1863_v51  ;;  %v773_v4 = vpop.f32.mrb[43].mxu1 }
 0x1f5   : > { %v774_v5 = vadd.f32 %v1863_v51, %v773_v4  ;;  %1524 = vmatprep.mubr.f32.mxu0 %v826_v0 }
 0x1f6   : > { %1525 = vmatmul.mubr.f32.gmra.mrb[40].mxu0 %v827_v2  ;;  %v829_v8 = vmax.f32 %v779_v3, 0.0 }
 0x1f7   : > { %v828_v6 = vmax.f32 %v774_v5, 0.0  ;;  %v1452_v7 = vpop.f32.mrb[44].mxu1 }
 0x1f8   : > { %v789_v9 = vadd.f32 %v1452_v7, %v1863_v51  ;;  %v783_v10 = vpop.f32.mrb[45].mxu1 }
 0x1f9   : > { %v784_v11 = vadd.f32 %v1863_v51, %v783_v10  ;;  %1527 = vmatprep.mubr.f32.mxu0 %v828_v6 }
 0x1fa   : > { %1528 = vmatmul.mubr.f32.gmra.mrb[42].mxu0 %v829_v8  ;;  %v831_v15 = vmax.f32 %v789_v9, 0.0 }
 0x1fb   : > { %v830_v12 = vmax.f32 %v784_v11, 0.0  ;;  %v1455_v13 = vpop.f32.mrb[46].mxu1 }
 0x1fc   : > { %v799_v16 = vadd.f32 %v1455_v13, %v1863_v51  ;;  %v793_v17 = vpop.f32.mrb[47].mxu1 }
 0x1fd   : > { %v794_v18 = vadd.f32 %v1863_v51, %v793_v17  ;;  %1530 = vmatprep.mubr.f32.mxu0 %v830_v12 }
 0x1fe   : > { %1531 = vmatmul.mubr.f32.gmra.mrb[44].mxu0 %v831_v15  ;;  %v833_v20 = vmax.f32 %v799_v16, 0.0 }
 0x1ff   : > { %v832_v19 = vmax.f32 %v794_v18, 0.0 }
 0x201   : > { %1533 = vmatprep.mubr.f32.mxu0 %v832_v19 }
 0x202   : > { %1534 = vmatmul.mubr.f32.gmra.mrb[46].mxu0 %v833_v20 }
 0x299   : > { %v1490_v51 = vpop.f32.mrb[16].mxu0 }
 0x29a   : > { %v910_v22 = vadd.f32 %v1490_v51, %v1900_v21  ;;  %v904_v23 = vpop.f32.mrb[17].mxu0 }
 0x29b   : > { %v905_v25 = vadd.f32 %v1900_v21, %v904_v23 }
 0x29c   : > { %1064 = vst.msk [vmem:[%s1907_s14 + $0x8] sm:$0xff] %vm219_vm0, %v910_v22 }
 0x29d   : > { %1063 = vst.msk [vmem:[%s1907_s14] sm:$0xff] %vm219_vm0, %v905_v25  ;;  %v1493_v26 = vpop.f32.mrb[18].mxu0 }
 0x29e   : > { %v920_v27 = vadd.f32 %v1493_v26, %v1900_v21  ;;  %v914_v24 = vpop.f32.mrb[19].mxu0 }
 0x29f   : > { %v915_v28 = vadd.f32 %v1900_v21, %v914_v24 }
 0x2a0   : > { %1066 = vst.msk [vmem:[%s1907_s14 + $0x18] sm:$0xff] %vm219_vm0, %v920_v27 }
 0x2a1   : > { %1065 = vst.msk [vmem:[%s1907_s14 + $0x10] sm:$0xff] %vm219_vm0, %v915_v28  ;;  %v1496_v29 = vpop.f32.mrb[20].mxu0 }
 0x2a2   : > { %v930_v30 = vadd.f32 %v1496_v29, %v1900_v21  ;;  %v924_v31 = vpop.f32.mrb[21].mxu0 }
 0x2a3   : > { %v925_v33 = vadd.f32 %v1900_v21, %v924_v31 }
 0x2a4   : > { %1068 = vst.msk [vmem:[%s1907_s14 + $0x28] sm:$0xff] %vm219_vm0, %v930_v30 }
 0x2a5   : > { %1067 = vst.msk [vmem:[%s1907_s14 + $0x20] sm:$0xff] %vm219_vm0, %v925_v33  ;;  %v1499_v32 = vpop.f32.mrb[22].mxu0 }
 0x2a6   : > { %v940_v34 = vadd.f32 %v1499_v32, %v1900_v21  ;;  %v934_v35 = vpop.f32.mrb[23].mxu0 }
 0x2a7   : > { %v935_v36 = vadd.f32 %v1900_v21, %v934_v35 }
 0x2a8   : > { %1070 = vst.msk [vmem:[%s1907_s14 + $0x38] sm:$0xff] %vm219_vm0, %v940_v34 }
 0x2a9   : > { %1069 = vst.msk [vmem:[%s1907_s14 + $0x30] sm:$0xff] %vm219_vm0, %v935_v36  ;;  %v1502_v37 = vpop.f32.mrb[24].mxu0 }
 0x2aa   : > { %v950_v38 = vadd.f32 %v1502_v37, %v1900_v21  ;;  %v944_v39 = vpop.f32.mrb[25].mxu0 }
 0x2ab   : > { %v945_v40 = vadd.f32 %v1900_v21, %v944_v39 }
 0x2ac   : > { %1072 = vst.msk [vmem:[%s1907_s14 + $0x48] sm:$0xff] %vm219_vm0, %v950_v38 }
 0x2ad   : > { %1071 = vst.msk [vmem:[%s1907_s14 + $0x40] sm:$0xff] %vm219_vm0, %v945_v40  ;;  %v1505_v41 = vpop.f32.mrb[26].mxu0 }
 0x2ae   : > { %v960_v42 = vadd.f32 %v1505_v41, %v1900_v21  ;;  %v954_v43 = vpop.f32.mrb[27].mxu0 }
 0x2af   : > { %v955_v44 = vadd.f32 %v1900_v21, %v954_v43 }
 0x2b0   : > { %1074 = vst.msk [vmem:[%s1907_s14 + $0x58] sm:$0xff] %vm219_vm0, %v960_v42 }
 0x2b1   : > { %1073 = vst.msk [vmem:[%s1907_s14 + $0x50] sm:$0xff] %vm219_vm0, %v955_v44  ;;  %v1508_v45 = vpop.f32.mrb[28].mxu0 }
 0x2b2   : > { %v970_v46 = vadd.f32 %v1508_v45, %v1900_v21  ;;  %v964_v47 = vpop.f32.mrb[29].mxu0 }
 0x2b3   : > { %v965_v48 = vadd.f32 %v1900_v21, %v964_v47 }
 0x2b4   : > { %1076 = vst.msk [vmem:[%s1907_s14 + $0x68] sm:$0xff] %vm219_vm0, %v970_v46 }
 0x2b5   : > { %1075 = vst.msk [vmem:[%s1907_s14 + $0x60] sm:$0xff] %vm219_vm0, %v965_v48  ;;  %v1511_v49 = vpop.f32.mrb[30].mxu0 }
 0x2b6   : > { %v980_v50 = vadd.f32 %v1511_v49, %v1900_v21  ;;  %v974_v14 = vpop.f32.mrb[31].mxu0 }
 0x2b7   : > { %v975_v52 = vadd.f32 %v1900_v21, %v974_v14 }
 0x2b8   : > { %1078 = vst.msk [vmem:[%s1907_s14 + $0x78] sm:$0xff] %vm219_vm0, %v980_v50 }
 0x2b9   : > { %1077 = vst.msk [vmem:[%s1907_s14 + $0x70] sm:$0xff] %vm219_vm0, %v975_v52  ;;  %v1514_v53 = vpop.f32.mrb[32].mxu0 }
 0x2ba   : > { %v990_v54 = vadd.f32 %v1514_v53, %v1900_v21  ;;  %v984_v55 = vpop.f32.mrb[33].mxu0 }
 0x2bb   : > { %v985_v56 = vadd.f32 %v1900_v21, %v984_v55 }
 0x2bc   : > { %1080 = vst.msk [vmem:[%s1907_s14 + $0x88] sm:$0xff] %vm219_vm0, %v990_v54 }
 0x2bd   : > { %1079 = vst.msk [vmem:[%s1907_s14 + $0x80] sm:$0xff] %vm219_vm0, %v985_v56  ;;  %v1517_v57 = vpop.f32.mrb[34].mxu0 }
 0x2be   : > { %v1000_v58 = vadd.f32 %v1517_v57, %v1900_v21  ;;  %v994_v59 = vpop.f32.mrb[35].mxu0 }
 0x2bf   : > { %v995_v60 = vadd.f32 %v1900_v21, %v994_v59 }
 0x2c0   : > { %1082 = vst.msk [vmem:[%s1907_s14 + $0x98] sm:$0xff] %vm219_vm0, %v1000_v58 }
 0x2c1   : > { %1081 = vst.msk [vmem:[%s1907_s14 + $0x90] sm:$0xff] %vm219_vm0, %v995_v60  ;;  %v1520_v61 = vpop.f32.mrb[36].mxu0 }
 0x2c2   : > { %v1010_v62 = vadd.f32 %v1520_v61, %v1900_v21  ;;  %v1004_v63 = vpop.f32.mrb[37].mxu0 }
 0x2c3   : > { %v1005_v0 = vadd.f32 %v1900_v21, %v1004_v63 }
 0x2c4   : > { %1084 = vst.msk [vmem:[%s1907_s14 + $0xa8] sm:$0xff] %vm219_vm0, %v1010_v62 }
 0x2c5   : > { %1083 = vst.msk [vmem:[%s1907_s14 + $0xa0] sm:$0xff] %vm219_vm0, %v1005_v0  ;;  %v1523_v1 = vpop.f32.mrb[38].mxu0 }
 0x2c6   : > { %v1020_v2 = vadd.f32 %v1523_v1, %v1900_v21  ;;  %v1014_v3 = vpop.f32.mrb[39].mxu0 }
 0x2c7   : > { %v1015_v4 = vadd.f32 %v1900_v21, %v1014_v3 }
 0x2c8   : > { %1086 = vst.msk [vmem:[%s1907_s14 + $0xb8] sm:$0xff] %vm219_vm0, %v1020_v2 }
 0x2c9   : > { %1085 = vst.msk [vmem:[%s1907_s14 + $0xb0] sm:$0xff] %vm219_vm0, %v1015_v4  ;;  %v1526_v5 = vpop.f32.mrb[40].mxu0 }
 0x2ca   : > { %v1030_v6 = vadd.f32 %v1526_v5, %v1900_v21  ;;  %v1024_v7 = vpop.f32.mrb[41].mxu0 }
 0x2cb   : > { %v1025_v8 = vadd.f32 %v1900_v21, %v1024_v7 }
 0x2cc   : > { %1088 = vst.msk [vmem:[%s1907_s14 + $0xc8] sm:$0xff] %vm219_vm0, %v1030_v6 }
 0x2cd   : > { %1087 = vst.msk [vmem:[%s1907_s14 + $0xc0] sm:$0xff] %vm219_vm0, %v1025_v8  ;;  %v1529_v9 = vpop.f32.mrb[42].mxu0 }
 0x2ce   : > { %v1040_v10 = vadd.f32 %v1529_v9, %v1900_v21  ;;  %v1034_v11 = vpop.f32.mrb[43].mxu0 }
 0x2cf   : > { %v1035_v12 = vadd.f32 %v1900_v21, %v1034_v11 }
 0x2d0   : > { %1090 = vst.msk [vmem:[%s1907_s14 + $0xd8] sm:$0xff] %vm219_vm0, %v1040_v10 }
 0x2d1   : > { %1089 = vst.msk [vmem:[%s1907_s14 + $0xd0] sm:$0xff] %vm219_vm0, %v1035_v12  ;;  %v1532_v13 = vpop.f32.mrb[44].mxu0 }
 0x2d2   : > { %v1050_v15 = vadd.f32 %v1532_v13, %v1900_v21  ;;  %v1044_v16 = vpop.f32.mrb[45].mxu0 }
 0x2d3   : > { %v1045_v17 = vadd.f32 %v1900_v21, %v1044_v16 }
 0x2d4   : > { %1092 = vst.msk [vmem:[%s1907_s14 + $0xe8] sm:$0xff] %vm219_vm0, %v1050_v15 }
 0x2d5   : > { %1091 = vst.msk [vmem:[%s1907_s14 + $0xe0] sm:$0xff] %vm219_vm0, %v1045_v17  ;;  %v1535_v18 = vpop.f32.mrb[46].mxu0 }
 0x2d6   : > { %v1060_v19 = vadd.f32 %v1535_v18, %v1900_v21  ;;  %v1054_v20 = vpop.f32.mrb[47].mxu0 }
 0x2d7   : > { %v1055_v51 = vadd.f32 %v1900_v21, %v1054_v20 }
 0x2d8   : > { %1094 = vst.msk [vmem:[%s1907_s14 + $0xf8] sm:$0xff] %vm219_vm0, %v1060_v19 }
 0x2d9   : > { %1093 = vst.msk [vmem:[%s1907_s14 + $0xf0] sm:$0xff] %vm219_vm0, %v1055_v51 }
 0x2da PF: > { %s12_s9 = sadd.s32 1, %s1616_s9  }
 0x2db   : > { %p9_p4 = scmp.ge.s32.totalorder %s12_s9, 4  }
 0x2dd   :  { %11 = sbr.rel (!%p9_p4) target bundleno = 1 (0x1), region = 58 }

</bundles_post_ra>
